<compile_context>
chip_gen: v5e
topology: v5e:2x2
jax: 0.10.0
libtpu: 0.0.40
codegen_flags: <defaults>
</compile_context>

<pallas_src>
import jax
import jax.numpy as jnp
import numpy as np
from jax.experimental import pallas as pl
from jax.experimental.pallas import tpu as pltpu

H = W = 64
LD_H, LD_W = 32, 128  # lane-dense (row-major) view of the 64x64 grid


def pendulum_kernel(params_ref, out_ref):
    # params_ref (SMEM, f32[5]): [phi1, phi2, g/l, 5*(1+noise)/(m*l*l), 0.1/(m*l*l)]
    phi1 = params_ref[0]
    phi2 = params_ref[1]
    g_over_l = params_ref[2]
    k_ctrl = params_ref[3]
    k_damp = params_ref[4]

    # Lane-dense (32,128) view: slab element (r, c) is grid element
    # (i, j) = (2*r + c//64, c % 64) of the original 64x64 domain.
    # x = y = linspace(-1, 1, 64):  x[j] = (2*j - 63) / 63;  xx[i,j] = x[j];  yy[i,j] = y[i].

    # Column-dependent pieces on one (1, 128) lane vector (256 EUP elements total).
    c = jax.lax.broadcasted_iota(jnp.int32, (1, LD_W), 1)             # 0..127
    j = jnp.where(c >= 64, c - 64, c).astype(jnp.float32)             # original column index
    x_row = (2.0 * j - 63.0) / 63.0                                   # x[j]
    tanh_x = jnp.tanh(phi1 * x_row)
    sin_x = jnp.sin(x_row)
    a_row = g_over_l * sin_x + k_ctrl * tanh_x                        # (1, 128)

    # Row-dependent pieces on two (32, 1) sublane vectors (even/odd original rows; 64 EUP elems).
    r = jax.lax.broadcasted_iota(jnp.int32, (LD_H, 1), 0).astype(jnp.float32)   # 0..31
    y_even = (4.0 * r - 63.0) / 63.0                                  # y[2r]
    y_odd = (4.0 * r - 61.0) / 63.0                                   # y[2r + 1]
    b_even = k_ctrl * jnp.tanh(phi2 * y_even) - k_damp * y_even       # (32, 1)
    b_odd = k_ctrl * jnp.tanh(phi2 * y_odd) - k_damp * y_odd          # (32, 1)

    # Right half of the 128 lanes holds the odd original rows.
    right = jax.lax.broadcasted_iota(jnp.int32, (LD_H, LD_W), 1) >= 64

    shape = (LD_H, LD_W)
    f1 = jnp.where(right,
                   jnp.broadcast_to(y_odd, shape),
                   jnp.broadcast_to(y_even, shape))                   # yy grid (lane-dense)
    f2 = jnp.broadcast_to(a_row, shape) + jnp.where(
        right,
        jnp.broadcast_to(b_odd, shape),
        jnp.broadcast_to(b_even, shape))

    # Full-vreg, unmasked stores (4 vregs each).
    out_ref[0] = f1
    out_ref[1] = f2


@jax.jit
def noisy_pendulum_forward(V, phi1, phi2, m, g, l, noise):
    """Returns f32[3, 64, 64] = stack((f1, f2, V)), matching NoisyPendulum.forward."""
    inv_ml2 = 1.0 / (m * l * l)
    params = jnp.stack([
        phi1,
        phi2,
        g / l,
        5.0 * (1.0 + noise) * inv_ml2,
        0.1 * inv_ml2,
    ]).astype(jnp.float32)

    f12 = pl.pallas_call(
        pendulum_kernel,
        out_shape=jax.ShapeDtypeStruct((2, LD_H, LD_W), jnp.float32),
        in_specs=[pl.BlockSpec(memory_space=pltpu.SMEM)],   # scalar params only
        out_specs=pl.BlockSpec(memory_space=pltpu.VMEM),
    )(params)

    f12 = f12.reshape(2, H, W)                              # lane-dense slab -> 64x64 grids
    v = V.astype(jnp.float32).reshape(1, H, W)              # no-op cast if already f32
    return jnp.concatenate([f12, v], axis=0)


if __name__ == "__main__":
    key = jax.random.PRNGKey(0)
    k_phi1, k_phi2, k_m, k_g, k_l, k_noise, k_v = jax.random.split(key, 7)

    # Parameters (torch.randn(()) in __init__), drawn deterministically here.
    phi1 = float(jax.random.normal(k_phi1, ()))
    phi2 = float(jax.random.normal(k_phi2, ()))

    # Per-forward random perturbations (np.random.uniform(-0.05, 0.05) in PyTorch).
    m = 0.15 + float(jax.random.uniform(k_m, (), minval=-0.05, maxval=0.05))
    g = 9.81 + float(jax.random.uniform(k_g, (), minval=-0.05, maxval=0.05))
    l = 0.5 + float(jax.random.uniform(k_l, (), minval=-0.05, maxval=0.05))
    # noise = torch.rand(()) * 0.1 - 0.05
    noise = float(jax.random.uniform(k_noise, ())) * 0.1 - 0.05

    V = jax.random.normal(k_v, (H, W), dtype=jnp.float32)

    out = noisy_pendulum_forward(V, phi1, phi2, m, g, l, noise)
    out = jax.block_until_ready(out)

    # Pure-JAX reference of the original torch math.
    x_lin = np.linspace(-1, 1, 64)
    xx_np, yy_np = np.meshgrid(x_lin, x_lin)
    xx = jnp.asarray(xx_np, dtype=jnp.float32)
    yy = jnp.asarray(yy_np, dtype=jnp.float32)
    control = (5.0 * jnp.tanh(phi1 * xx) + 5.0 * jnp.tanh(phi2 * yy)) * (1.0 + noise)
    f1_ref = yy
    f2_ref = g * jnp.sin(xx) / l + (control - 0.1 * yy) / (m * l * l)
    ref = jnp.stack((f1_ref, f2_ref, V))
    np.testing.assert_allclose(np.asarray(out), np.asarray(ref), rtol=1e-5, atol=1e-4)

    assert out.shape == (3, H, W) and out.dtype == jnp.float32
    print("KERNEL_OK")
</pallas_src>

<mosaic_0001>
module attributes {stable_mosaic.version = 11 : i64} {
  func.func @pendulum_kernel(%arg0: memref<5xf32, #tpu.memory_space<smem>>, %arg1: memref<2x32x128xf32, #tpu.memory_space<vmem>>) attributes {dimension_semantics = [], scalar_prefetch = 0 : i64, scratch_operands = 0 : i64, tpu.core_type = #tpu.core_type<tc>} {
    %c0 = arith.constant 0 : index
    %0 = memref.load %arg0[%c0] : memref<5xf32, #tpu.memory_space<smem>>
    %c1 = arith.constant 1 : index
    %1 = memref.load %arg0[%c1] : memref<5xf32, #tpu.memory_space<smem>>
    %c2 = arith.constant 2 : index
    %2 = memref.load %arg0[%c2] : memref<5xf32, #tpu.memory_space<smem>>
    %c3 = arith.constant 3 : index
    %3 = memref.load %arg0[%c3] : memref<5xf32, #tpu.memory_space<smem>>
    %c4 = arith.constant 4 : index
    %4 = memref.load %arg0[%c4] : memref<5xf32, #tpu.memory_space<smem>>
    %5 = tpu.iota {dimensions = array<i32: 1>} : vector<1x128xi32>
    %c64_i32 = arith.constant 64 : i32
    %6 = vector.broadcast %c64_i32 : i32 to vector<1x128xi32>
    %7 = arith.cmpi sge, %5, %6 : vector<1x128xi32>
    %c64_i32_0 = arith.constant 64 : i32
    %8 = vector.broadcast %c64_i32_0 : i32 to vector<1x128xi32>
    %9 = arith.subi %5, %8 : vector<1x128xi32>
    %10 = arith.select %7, %9, %5 : vector<1x128xi1>, vector<1x128xi32>
    %11 = arith.sitofp %10 : vector<1x128xi32> to vector<1x128xf32>
    %cst = arith.constant 2.000000e+00 : f32
    %12 = vector.broadcast %cst : f32 to vector<1x128xf32>
    %13 = arith.mulf %12, %11 : vector<1x128xf32>
    %cst_1 = arith.constant 6.300000e+01 : f32
    %14 = vector.broadcast %cst_1 : f32 to vector<1x128xf32>
    %15 = arith.subf %13, %14 : vector<1x128xf32>
    %cst_2 = arith.constant 6.300000e+01 : f32
    %16 = vector.broadcast %cst_2 : f32 to vector<1x128xf32>
    %17 = arith.divf %15, %16 : vector<1x128xf32>
    %18 = vector.broadcast %0 : f32 to vector<1x128xf32>
    %19 = arith.mulf %18, %17 : vector<1x128xf32>
    %20 = math.tanh %19 : vector<1x128xf32>
    %21 = math.sin %17 : vector<1x128xf32>
    %22 = vector.broadcast %2 : f32 to vector<1x128xf32>
    %23 = arith.mulf %22, %21 : vector<1x128xf32>
    %24 = vector.broadcast %3 : f32 to vector<1x128xf32>
    %25 = arith.mulf %24, %20 : vector<1x128xf32>
    %26 = arith.addf %23, %25 : vector<1x128xf32>
    %27 = tpu.iota {dimensions = array<i32: 0>} : vector<32x1xi32>
    %28 = arith.sitofp %27 : vector<32x1xi32> to vector<32x1xf32>
    %cst_3 = arith.constant 4.000000e+00 : f32
    %29 = vector.broadcast %cst_3 : f32 to vector<32x1xf32>
    %30 = arith.mulf %29, %28 : vector<32x1xf32>
    %cst_4 = arith.constant 6.300000e+01 : f32
    %31 = vector.broadcast %cst_4 : f32 to vector<32x1xf32>
    %32 = arith.subf %30, %31 : vector<32x1xf32>
    %cst_5 = arith.constant 6.300000e+01 : f32
    %33 = vector.broadcast %cst_5 : f32 to vector<32x1xf32>
    %34 = arith.divf %32, %33 : vector<32x1xf32>
    %cst_6 = arith.constant 4.000000e+00 : f32
    %35 = vector.broadcast %cst_6 : f32 to vector<32x1xf32>
    %36 = arith.mulf %35, %28 : vector<32x1xf32>
    %cst_7 = arith.constant 6.100000e+01 : f32
    %37 = vector.broadcast %cst_7 : f32 to vector<32x1xf32>
    %38 = arith.subf %36, %37 : vector<32x1xf32>
    %cst_8 = arith.constant 6.300000e+01 : f32
    %39 = vector.broadcast %cst_8 : f32 to vector<32x1xf32>
    %40 = arith.divf %38, %39 : vector<32x1xf32>
    %41 = vector.broadcast %1 : f32 to vector<32x1xf32>
    %42 = arith.mulf %41, %34 : vector<32x1xf32>
    %43 = math.tanh %42 : vector<32x1xf32>
    %44 = vector.broadcast %3 : f32 to vector<32x1xf32>
    %45 = arith.mulf %44, %43 : vector<32x1xf32>
    %46 = vector.broadcast %4 : f32 to vector<32x1xf32>
    %47 = arith.mulf %46, %34 : vector<32x1xf32>
    %48 = arith.subf %45, %47 : vector<32x1xf32>
    %49 = vector.broadcast %1 : f32 to vector<32x1xf32>
    %50 = arith.mulf %49, %40 : vector<32x1xf32>
    %51 = math.tanh %50 : vector<32x1xf32>
    %52 = vector.broadcast %3 : f32 to vector<32x1xf32>
    %53 = arith.mulf %52, %51 : vector<32x1xf32>
    %54 = vector.broadcast %4 : f32 to vector<32x1xf32>
    %55 = arith.mulf %54, %40 : vector<32x1xf32>
    %56 = arith.subf %53, %55 : vector<32x1xf32>
    %57 = tpu.iota {dimensions = array<i32: 1>} : vector<32x128xi32>
    %c64_i32_9 = arith.constant 64 : i32
    %58 = vector.broadcast %c64_i32_9 : i32 to vector<32x128xi32>
    %59 = arith.cmpi sge, %57, %58 : vector<32x128xi32>
    %60 = vector.shape_cast %40 : vector<32x1xf32> to vector<32x1xf32>
    %61 = vector.broadcast %60 : vector<32x1xf32> to vector<32x128xf32>
    %62 = vector.shape_cast %34 : vector<32x1xf32> to vector<32x1xf32>
    %63 = vector.broadcast %62 : vector<32x1xf32> to vector<32x128xf32>
    %64 = arith.select %59, %61, %63 : vector<32x128xi1>, vector<32x128xf32>
    %65 = vector.shape_cast %26 : vector<1x128xf32> to vector<1x128xf32>
    %66 = vector.broadcast %65 : vector<1x128xf32> to vector<32x128xf32>
    %67 = vector.shape_cast %56 : vector<32x1xf32> to vector<32x1xf32>
    %68 = vector.broadcast %67 : vector<32x1xf32> to vector<32x128xf32>
    %69 = vector.shape_cast %48 : vector<32x1xf32> to vector<32x1xf32>
    %70 = vector.broadcast %69 : vector<32x1xf32> to vector<32x128xf32>
    %71 = arith.select %59, %68, %70 : vector<32x128xi1>, vector<32x128xf32>
    %72 = arith.addf %66, %71 : vector<32x128xf32>
    %c0_10 = arith.constant 0 : index
    %c0_11 = arith.constant 0 : index
    %c0_12 = arith.constant 0 : index
    %73 = vector.load %arg1[%c0_10, %c0_11, %c0_12] : memref<2x32x128xf32, #tpu.memory_space<vmem>>, vector<1x32x128xf32>
    %74 = vector.shape_cast %73 : vector<1x32x128xf32> to vector<32x128xf32>
    %75 = vector.shape_cast %64 : vector<32x128xf32> to vector<1x32x128xf32>
    tpu.vector_store %arg1[%c0_10, %c0_11, %c0_12], %75 {strides = array<i32>} : memref<2x32x128xf32, #tpu.memory_space<vmem>>, vector<1x32x128xf32>,
    %c1_13 = arith.constant 1 : index
    %c0_14 = arith.constant 0 : index
    %c0_15 = arith.constant 0 : index
    %76 = vector.load %arg1[%c1_13, %c0_14, %c0_15] : memref<2x32x128xf32, #tpu.memory_space<vmem>>, vector<1x32x128xf32>
    %77 = vector.shape_cast %76 : vector<1x32x128xf32> to vector<32x128xf32>
    %78 = vector.shape_cast %72 : vector<32x128xf32> to vector<1x32x128xf32>
    tpu.vector_store %arg1[%c1_13, %c0_14, %c0_15], %78 {strides = array<i32>} : memref<2x32x128xf32, #tpu.memory_space<vmem>>, vector<1x32x128xf32>,
    return
  }
}

</mosaic_0001>

<bundles_post_ra>
// kernel: noisy_pendulum_forward.1
= control target key start
LH: loop header
LB: loop body
LE: loop exit
PB: predicated region body
PF: predicated region fallthrough
CT: control target
= control target key end

     0   :  { %6 = vsyncpa [#allocation3], 0  ;;  %s366_s9 = smov [#allocation2]   ;;  %s543_s0 = inlined_call_operand.vmem [shape: f32[5], index: 0, kind: input, shape index: {}]   ;;  %s544_s1 = inlined_call_operand.vmem [shape: f32[2,32,128], index: 1, kind: output, shape index: {}]  }
   0x1   :  { %s12_s8 = sshll.u32 %s543_s0, 4  ;;  %s13_s8 = int_to_ptr.vmem [resolvable:$true] %s12_s8 }
   0x2   :  { %15 = dma.vmem_to_smem %s13_s8, 16, %s366_s9, [#allocation3]  }
   0x3   :  { %364 = dma.done.wait [#allocation3], 16  }
   0x4   :  { %365 = vsyncadd [#allocation3], 4294967280 }
   0x5   :  { %20 = sfence }
   0x6   :  { %v26_v0 = vlaneseq  ;;  %v367_v1 = vmov 63.0   ;;  %v368_v58 = vmov 683565275   ;;  %v369_v60 = vmov 2475754826   ;;  %s302_s17 = sld [smem:[#allocation2 + $0x1]] }
   0x7   :  { %332 = vrcp.f32 %v367_v1  ;;  %v370_v62 = vmov 2131351028   ;;  %s480_s18 = sld [smem:[#allocation2]] }
   0x8   :  { %v388_v2 = vand.u32 127, %v26_v0  ;;  %v206_v3 = vshrl.u32 %v26_v0, 7  ;;  %v371_v0 = vmov 2102212464   ;;  %s494_s19 = sld [smem:[#allocation2 + $0x3]] }
   0x9   :  { %s305_s20 = sld [smem:[#allocation2 + $0x4]] }
   0xa   :  { %vm28_vm0 = vcmp.ge.s32.totalorder %v388_v2, 64  ;;  %v306_v4 = vadd.s32 4294967232, %v388_v2  ;;  %v207_v5 = vadd.s32 8, %v206_v3  ;;  %v210_v6 = vcvt.s32.f32 %v206_v3  ;;  %s507_s21 = sld [smem:[#allocation2 + $0x2]] }
   0xb   :  { %v208_v7 = vadd.s32 16, %v206_v3  ;;  %v209_v8 = vadd.s32 24, %v206_v3  ;;  %v372_v3 = vmov 920167782  }
   0xc   :  { %v30_v9 = vsel %vm28_vm0, %v306_v4, %v388_v2  ;;  %v211_v10 = vcvt.s32.f32 %v207_v5  ;;  %v214_v15 = vmul.f32 4.0, %v210_v6 }
   0xd   :  { %v333_v11 = vpop.eup %332  ;;  %v31_v12 = vcvt.s32.f32 %v30_v9  ;;  %v212_v13 = vcvt.s32.f32 %v208_v7  ;;  %v213_v16 = vcvt.s32.f32 %v209_v8  ;;  %v373_v9 = vmov 1326507024  }
   0xe   :  { %v35_v14 = vmul.f32 63.0, %v333_v11  ;;  %v215_v18 = vmul.f32 4.0, %v211_v10  ;;  %vm39_vm1 = vweird.f32 %v333_v11  ;;  %v311_v22 = vadd.f32 -63.0, %v214_v15 }
   0xf   :  { %v32_v19 = vmul.f32 2.0, %v31_v12  ;;  %v216_v20 = vmul.f32 4.0, %v212_v13  ;;  %v315_v23 = vadd.f32 -61.0, %v214_v15  ;;  %v217_v24 = vmul.f32 4.0, %v213_v16 }
  0x10   :  { %v36_v17 = vsub.f32 1.0, %v35_v14  ;;  %v312_v26 = vadd.f32 -63.0, %v215_v18  ;;  %v316_v27 = vadd.f32 -61.0, %v215_v18 }
  0x11   :  { %v307_v28 = vadd.f32 -63.0, %v32_v19  ;;  %v313_v29 = vadd.f32 -63.0, %v216_v20  ;;  %v317_v30 = vadd.f32 -61.0, %v216_v20  ;;  %v314_v34 = vadd.f32 -63.0, %v217_v24 }
  0x12   :  { %v37_v21 = vmul.f32 %v333_v11, %v36_v17  ;;  %v318_v35 = vadd.f32 -61.0, %v217_v24 }
  0x14   :  { %v38_v25 = vadd.f32 %v333_v11, %v37_v21 }
  0x16   :  { %v40_v31 = vsel %vm39_vm1, %v333_v11, %v38_v25 }
  0x17   :  { %v395_v32 = vmul.f32 %v311_v22, %v40_v31  ;;  %v397_v33 = vmul.f32 %v315_v23, %v40_v31  ;;  %v399_v36 = vmul.f32 %v312_v26, %v40_v31  ;;  %v401_v37 = vmul.f32 %v316_v27, %v40_v31 }
  0x18   :  { %v403_v38 = vmul.f32 %v307_v28, %v40_v31  ;;  %v409_v40 = vmul.f32 %v313_v29, %v40_v31  ;;  %v411_v41 = vmul.f32 %v317_v30, %v40_v31  ;;  %v427_v44 = vmul.f32 %v314_v34, %v40_v31 }
  0x19   :  { %v276_v39 = vsel %vm28_vm0, %v397_v33, %v395_v32  ;;  %v277_v42 = vsel %vm28_vm0, %v401_v37, %v399_v36  ;;  %v429_v45 = vmul.f32 %v318_v35, %v40_v31 }
  0x1a   :  { %288 = vst [vmem:[%s544_s1] sm:$0xff] %v276_v39  ;;  %v278_v43 = vsel %vm28_vm0, %v411_v41, %v409_v40  ;;  %v48_v47 = vand.u32 2139095040, %v403_v38  ;;  %v45_v49 = vand.u32 2147483647, %v403_v38  ;;  %vm47_vm14 = vcmp.lt.s32.totalorder %v403_v38, 0 }
  0x1b   :  { %289 = vst [vmem:[%s544_s1 + $0x8] sm:$0xff] %v277_v42  ;;  %v279_v46 = vsel %vm28_vm0, %v429_v45, %v427_v44 }
  0x1c   :  { %290 = vst [vmem:[%s544_s1 + $0x10] sm:$0xff] %v278_v43  ;;  %v49_v48 = vshrl.u32 %v48_v47, 23  ;;  %v52_v52 = vand.u32 8388607, %v45_v49  ;;  %vm487_vm15 = vcmp.le.f32.partialorder %v45_v49, 0.7853982 }
  0x1d   :  { %291 = vst [vmem:[%s544_s1 + $0x18] sm:$0xff] %v279_v46 }
  0x1e   :  { %v308_v50 = vadd.s32 4294967169, %v49_v48  ;;  %v53_v55 = vor.u32 8388608, %v52_v52 }
  0x20   :  { %v55_v51 = vadd.s32 1, %v308_v50  ;;  %v448_v11 = vshll.u32 %v53_v55, 8 }
  0x22   :  { %vm56_vm2 = vcmp.gt.s32.totalorder %v55_v51, 0  ;;  %v94_v23 = vand.u32 65535, %v448_v11  ;;  %v95_v24 = vshrl.u32 %v448_v11, 16 }
  0x23   :  { %v57_v53 = vsel %vm56_vm2, %v55_v51, 0 }
  0x24   :  { %v59_v54 = vand.u32 31, %v57_v53  ;;  %v445_v56 = vshrl.u32 %v57_v53, 5 }
  0x26   :  { %v60_v57 = vsub.s32 32, %v59_v54  ;;  %v62_v59 = vshll.u32 %v368_v58, %v59_v54  ;;  %v65_v61 = vshll.u32 %v369_v60, %v59_v54  ;;  %v68_v63 = vshll.u32 %v370_v62, %v59_v54 }
  0x27   :  { %v71_v1 = vshll.u32 %v371_v0, %v59_v54  ;;  %v74_v4 = vshll.u32 %v372_v3, %v59_v54  ;;  %vm77_vm3 = vcmp.lt.s32.totalorder %v445_v56, 1  ;;  %vm80_vm4 = vcmp.lt.s32.totalorder %v445_v56, 4 }
  0x28   :  { %v63_v5 = vshrl.u32 %v369_v60, %v60_v57  ;;  %v66_v6 = vshrl.u32 %v370_v62, %v60_v57  ;;  %v69_v7 = vshrl.u32 %v371_v0, %v60_v57  ;;  %v72_v8 = vshrl.u32 %v372_v3, %v60_v57 }
  0x29   :  { %v75_v10 = vshrl.u32 %v373_v9, %v60_v57  ;;  %vm79_vm5 = vcmp.lt.s32.totalorder %v445_v56, 3  ;;  %vm78_vm6 = vcmp.lt.s32.totalorder %v445_v56, 2  ;;  %v61_v31 = vshrl.u32 %v368_v58, %v60_v57 }
  0x2a   :  { %v64_v12 = vor.u32 %v63_v5, %v62_v59  ;;  %v67_v13 = vor.u32 %v66_v6, %v65_v61  ;;  %v70_v14 = vor.u32 %v69_v7, %v68_v63  ;;  %v73_v15 = vor.u32 %v72_v8, %v71_v1 }
  0x2b   :  { %v76_v16 = vor.u32 %v75_v10, %v74_v4  ;;  %v374_v58 = vmov 0  }
  0x2c   :  { %v85_v17 = vsel %vm77_vm3, %v64_v12, %v67_v13  ;;  %v89_v18 = vsel %vm77_vm3, %v67_v13, %v70_v14  ;;  %v86_v19 = vsel %vm80_vm4, %v73_v15, 920167782  ;;  %v81_v54 = vsel %vm77_vm3, %v61_v31, %v64_v12 }
  0x2d   :  { %v90_v20 = vsel %vm80_vm4, %v76_v16, 1326507024  ;;  %v87_v21 = vsel %vm79_vm5, %v70_v14, %v86_v19  ;;  %v82_v57 = vsel %vm80_vm4, %v70_v14, 2102212464  ;;  %vm188_vm3 = vweird.f32 %v403_v38 }
  0x2e   :  { %v91_v22 = vsel %vm79_vm5, %v73_v15, %v90_v20  ;;  %v88_v25 = vsel %vm78_vm6, %v85_v17, %v87_v21  ;;  %v83_v4 = vsel %vm79_vm5, %v67_v13, %v82_v57 }
  0x2f   :  { %v92_v26 = vsel %vm78_vm6, %v89_v18, %v91_v22  ;;  %v118_v29 = vand.u32 65535, %v88_v25  ;;  %v119_v30 = vshrl.u32 %v88_v25, 16  ;;  %v84_v14 = vsel %vm78_vm6, %v81_v54, %v83_v4 }
  0x30   :  { %v96_v27 = vand.u32 65535, %v92_v26  ;;  %v97_v28 = vshrl.u32 %v92_v26, 16  ;;  %v138_v18 = vmul.u32 %v448_v11, %v84_v14  ;;  %v42_v4 = vstv %s480_s18 }
  0x31   :  { %v120_v42 = vmul.u32 %v118_v29, %v94_v23  ;;  %v121_v43 = vmul.u32 %v119_v30, %v94_v23  ;;  %v122_v46 = vmul.u32 %v118_v29, %v95_v24  ;;  %v123_v51 = vmul.u32 %v119_v30, %v95_v24 }
  0x32   :  { %v98_v34 = vmul.u32 %v96_v27, %v94_v23  ;;  %v99_v35 = vmul.u32 %v97_v28, %v94_v23  ;;  %v100_v39 = vmul.u32 %v96_v27, %v95_v24  ;;  %v101_v47 = vmul.u32 %v97_v28, %v95_v24 }
  0x33   :  { %v124_v52 = vshll.u32 %v121_v43, 16  ;;  %v126_v53 = vshll.u32 %v122_v46, 16  ;;  %v125_v1 = vshrl.u32 %v121_v43, 16  ;;  %v127_v8 = vshrl.u32 %v122_v46, 16 }
  0x34   :  { %v102_v48 = vshll.u32 %v99_v35, 16  ;;  %v104_v50 = vshll.u32 %v100_v39, 16  ;;  %v103_v61 = vshrl.u32 %v99_v35, 16  ;;  %v105_v5 = vshrl.u32 %v100_v39, 16 }
  0x35   :  { %vm128_vm8 = vc.u32 %v120_v42, %v124_v52  ;;  %v130_v60 = vadd.s32 %v124_v52, %v120_v42 }
  0x36   :  { %vm106_vm7 = vc.u32 %v98_v34, %v102_v48  ;;  %v108_v55 = vadd.s32 %v102_v48, %v98_v34  ;;  %v129_v63 = vsel %vm128_vm8, 1, %v374_v58 }
  0x37   :  { %v107_v59 = vsel %vm106_vm7, 1, %v374_v58  ;;  %v131_v3 = vadd.s32 %v129_v63, %v123_v51  ;;  %vm132_vm10 = vc.u32 %v130_v60, %v126_v53  ;;  %v134_v12 = vadd.s32 %v130_v60, %v126_v53 }
  0x38   :  { %v109_v62 = vadd.s32 %v107_v59, %v101_v47  ;;  %vm110_vm9 = vc.u32 %v108_v55, %v104_v50  ;;  %v133_v7 = vsel %vm132_vm10, 1, %v374_v58  ;;  %v234_v47 = vstv %s302_s17 }
  0x39   :  { %v111_v0 = vsel %vm110_vm9, 1, %v374_v58  ;;  %v135_v9 = vadd.s32 %v133_v7, %v131_v3  ;;  %v235_v52 = vmul.f32 %v234_v47, %v395_v32  ;;  %v256_v53 = vmul.f32 %v234_v47, %v397_v33 }
  0x3a   :  { %v113_v6 = vadd.s32 %v111_v0, %v109_v62  ;;  %v236_v58 = vmul.f32 %v234_v47, %v399_v36  ;;  %v257_v59 = vmul.f32 %v234_v47, %v401_v37  ;;  %v258_v63 = vmul.f32 %v234_v47, %v411_v41 }
  0x3b   :  { %v136_v15 = vadd.s32 %v135_v9, %v125_v1  ;;  %334 = vtanh.f32 %v235_v52  ;;  %v238_v1 = vmul.f32 %v234_v47, %v427_v44  ;;  %v259_v3 = vmul.f32 %v234_v47, %v429_v45 }
  0x3c   :  { %v114_v10 = vadd.s32 %v113_v6, %v103_v61  ;;  %v237_v61 = vmul.f32 %v234_v47, %v409_v40  ;;  %336 = vtanh.f32 %v256_v53 }
  0x3d   :  { %v137_v17 = vadd.s32 %v136_v15, %v127_v8  ;;  %338 = vtanh.f32 %v236_v58 }
  0x3e   :  { %v115_v16 = vadd.s32 %v114_v10, %v105_v5  ;;  %340 = vtanh.f32 %v257_v59 }
  0x3f   :  { %v141_v19 = vadd.s32 1, %v137_v17  ;;  %342 = vtanh.f32 %v237_v61 }
  0x40   :  { %vm140_vm11 = vc.u32 %v115_v16, %v134_v12  ;;  %v139_v56 = vadd.s32 %v134_v12, %v115_v16  ;;  %344 = vtanh.f32 %v258_v63  ;;  %v43_v12 = vmul.f32 %v42_v4, %v403_v38 }
  0x41   :  { %v142_v20 = vsel %vm140_vm11, %v141_v19, %v137_v17  ;;  %v335_v10 = vpop.eup %334  ;;  %346 = vtanh.f32 %v238_v1 }
  0x42   :  { %v143_v21 = vadd.s32 %v142_v20, %v138_v18  ;;  %v337_v14 = vpop.eup %336  ;;  %348 = vtanh.f32 %v259_v3 }
  0x43   :  { %v339_v18 = vpop.eup %338  ;;  %350 = vtanh.f32 %v43_v12 }
  0x44   :  { %v144_v13 = vadd.s32 536870912, %v143_v21  ;;  %v341_v19 = vpop.eup %340 }
  0x46   :  { %v145_v22 = vshrl.u32 %v144_v13, 30  ;;  %v202_v13 = vstv %s494_s19 }
  0x48   :  { %v146_v23 = vshll.u32 %v145_v22, 30  ;;  %v169_v50 = vsub.s32 4, %v145_v22 }
  0x4a   :  { %v147_v24 = vsub.s32 %v143_v21, %v146_v23  ;;  %v170_v57 = vsel %vm47_vm14, %v169_v50, %v145_v22  ;;  %v247_v22 = vstv %s305_s20  ;;  %v343_v23 = vpop.eup %342 }
  0x4b   :  { %v172_v62 = vsel %vm487_vm15, 0, %v170_v57  ;;  %v250_v47 = vmul.f32 %v247_v22, %v409_v40  ;;  %v251_v53 = vmul.f32 %v247_v22, %v427_v44  ;;  %v200_v57 = vstv %s507_s21 }
  0x4c   :  { %vm148_vm12 = vcmp.lt.s32.totalorder %v147_v24, 0  ;;  %v149_v25 = vsub.s32 0, %v147_v24  ;;  %v189_v7 = vadd.s32 3, %v172_v62 }
  0x4e   :  { %v150_v26 = vsel %vm148_vm12, %v149_v25, %v147_v24  ;;  %v190_v17 = vand.u32 3, %v189_v7 }
  0x4f   :  { %v151_v27 = vclz %v150_v26 }
  0x50   :  { %vm192_vm1 = vcmp.eq.s32.totalorder %v190_v17, 0  ;;  %vm195_vm2 = vcmp.eq.s32.totalorder %v190_v17, 2  ;;  %vm191_vm4 = vcmp.lt.s32.totalorder %v190_v17, 2 }
  0x51   :  { %v309_v28 = vadd.s32 4294967294, %v151_v27 }
  0x53   :  { %vm310_vm13 = vcmp.lt.s32.totalorder %v309_v28, 0 }
  0x54   :  { %v154_v29 = vsel %vm310_vm13, 0, %v309_v28  ;;  %v243_v28 = vmul.f32 %v335_v10, %v202_v13 }
  0x55   :  { %v155_v30 = vsub.s32 32, %v154_v29  ;;  %v156_v31 = vshll.u32 %v147_v24, %v154_v29  ;;  %v159_v11 = vsub.s32 4294967266, %v154_v29  ;;  %v345_v24 = vpop.eup %344  ;;  %v264_v29 = vmul.f32 %v337_v14, %v202_v13 }
  0x56   :  { %v347_v27 = vpop.eup %346 }
  0x57   :  { %v157_v34 = vshrl.u32 %v139_v56, %v155_v30  ;;  %v160_v35 = vadd.s32 127, %v159_v11  ;;  %v248_v56 = vmul.f32 %v247_v22, %v395_v32  ;;  %v268_v30 = vmul.f32 %v247_v22, %v397_v33 }
  0x58   :  { %v270_v32 = vmul.f32 %v247_v22, %v411_v41  ;;  %v246_v33 = vmul.f32 %v347_v27, %v202_v13 }
  0x59   :  { %v158_v39 = vor.u32 %v157_v34, %v156_v31  ;;  %v161_v42 = vshll.u32 %v160_v35, 23  ;;  %v349_v31 = vpop.eup %348  ;;  %v244_v35 = vmul.f32 %v339_v18, %v202_v13  ;;  %v252_v40 = vsub.f32 %v243_v28, %v248_v56 }
  0x5a   :  { %v351_v52 = vpop.eup %350  ;;  %v267_v54 = vmul.f32 %v349_v31, %v202_v13  ;;  %v272_v58 = vsub.f32 %v264_v29, %v268_v30  ;;  %v255_v63 = vsub.f32 %v246_v33, %v251_v53 }
  0x5b   :  { %v162_v43 = vor.u32 4788187, %v161_v42  ;;  %v165_v46 = vcvt.s32.f32 %v158_v39  ;;  %v249_v39 = vmul.f32 %v247_v22, %v399_v36  ;;  %v265_v42 = vmul.f32 %v341_v19, %v202_v13 }
  0x5c   :  { %v203_v44 = vmul.f32 %v351_v52, %v202_v13  ;;  %v280_v3 = vsel %vm28_vm0, %v272_v58, %v252_v40 }
  0x5d   :  { %v163_v48 = vand.u32 2147483647, %v162_v43  ;;  %v269_v43 = vmul.f32 %v247_v22, %v401_v37  ;;  %v253_v59 = vsub.f32 %v244_v35, %v249_v39 }
  0x5f   :  { %v166_v51 = vmul.f32 %v165_v46, %v163_v48  ;;  %v245_v46 = vmul.f32 %v343_v23, %v202_v13  ;;  %v273_v41 = vsub.f32 %v265_v42, %v269_v43 }
  0x61   :  { %v167_v55 = vxor.u32 2147483648, %v166_v51  ;;  %v254_v61 = vsub.f32 %v245_v46, %v250_v47  ;;  %v281_v4 = vsel %vm28_vm0, %v273_v41, %v253_v59 }
  0x63   :  { %v168_v60 = vsel %vm47_vm14, %v167_v55, %v166_v51  ;;  %v266_v51 = vmul.f32 %v345_v24, %v202_v13  ;;  %v271_v55 = vmul.f32 %v247_v22, %v429_v45 }
  0x64   :  { %v171_v49 = vsel %vm487_vm15, %v403_v38, %v168_v60 }
  0x65   :  { %v173_v0 = vmul.f32 %v171_v49, %v171_v49 }
  0x67   :  { %v174_v5 = vmul.f32 -0.001358992, %v173_v0  ;;  %v181_v6 = vmul.f32 -0.00019511016, %v173_v0 }
  0x69   :  { %v175_v8 = vadd.f32 0.041655596, %v174_v5  ;;  %v182_v9 = vadd.f32 0.008332121, %v181_v6 }
  0x6b   :  { %v176_v15 = vmul.f32 %v175_v8, %v173_v0  ;;  %v183_v16 = vmul.f32 %v182_v9, %v173_v0 }
  0x6d   :  { %v177_v20 = vadd.f32 -0.4999988, %v176_v15  ;;  %v184_v21 = vadd.f32 -0.16666654, %v183_v16 }
  0x6f   :  { %v178_v25 = vmul.f32 %v177_v20, %v173_v0  ;;  %v185_v26 = vmul.f32 %v184_v21, %v173_v0  ;;  %v275_v0 = vsub.f32 %v267_v54, %v271_v55 }
  0x71   :  { %v179_v11 = vadd.f32 1.0, %v178_v25  ;;  %v186_v34 = vadd.f32 1.0, %v185_v26  ;;  %v283_v7 = vsel %vm28_vm0, %v275_v0, %v255_v63 }
  0x73   :  { %v187_v48 = vmul.f32 %v186_v34, %v171_v49  ;;  %v196_v50 = vxor.u32 2147483648, %v179_v11  ;;  %v274_v49 = vsub.f32 %v266_v51, %v270_v32 }
  0x75   :  { %v193_v36 = vxor.u32 2147483648, %v187_v48  ;;  %v197_v37 = vsel %vm195_vm2, %v196_v50, %v187_v48  ;;  %v282_v5 = vsel %vm28_vm0, %v274_v49, %v254_v61 }
  0x77   :  { %v194_v60 = vsel %vm192_vm1, %v179_v11, %v193_v36 }
  0x78   :  { %v198_v62 = vsel %vm191_vm4, %v194_v60, %v197_v37 }
  0x79   :  { %v199_v45 = vsel %vm188_vm3, nan, %v198_v62 }
  0x7a   :  { %v201_v1 = vmul.f32 %v200_v57, %v199_v45 }
  0x7c   :  { %v204_v6 = vadd.f32 %v203_v44, %v201_v1 }
  0x7e   :  { %v284_v8 = vadd.f32 %v280_v3, %v204_v6  ;;  %v285_v9 = vadd.f32 %v281_v4, %v204_v6  ;;  %v286_v10 = vadd.f32 %v282_v5, %v204_v6  ;;  %v287_v12 = vadd.f32 %v283_v7, %v204_v6 }
  0x80   :  { %319 = vst [vmem:[%s544_s1 + $0x20] sm:$0xff] %v284_v8 }
  0x81   :  { %320 = vst [vmem:[%s544_s1 + $0x28] sm:$0xff] %v285_v9 }
  0x82   :  { %321 = vst [vmem:[%s544_s1 + $0x30] sm:$0xff] %v286_v10 }
  0x83   :  { %322 = vst [vmem:[%s544_s1 + $0x38] sm:$0xff] %v287_v12 }
  0x84   :  { %301 = vsyncpa [#allocation3], 1 }

</bundles_post_ra>
